<compile_context>
chip_gen: v5e
topology: v5e:2x2
jax: 0.10.0
libtpu: 0.0.40
codegen_flags: <defaults>
</compile_context>

<pallas_src>
import functools

import jax
import jax.numpy as jnp
import numpy as np
from jax.experimental import pallas as pl
from jax.experimental.pallas import tpu as pltpu

INF8 = 255
_NUM_LIN_CODES = INF8 + 1  # 256 codes in the linear_bias table


def _round_up(x, m):
    return (x + m - 1) // m * m


def _cdiv(a, b):
    return -(-a // b)


def _se_kernel(idx_ref, w_hi_ref, w_mid_ref, w_lo_ref, out_ref):
    # idx_ref : (1, 1, TP) int32  -- flattened bias codes (virtual codes >= 256 folded in)
    # w_*_ref : (H, NC)   bf16    -- embedding table split into 3 bf16 chunks (resident)
    # out_ref : (1, H, TP) f32
    idx = idx_ref[0]                                               # (1, TP) int32
    nc = w_hi_ref.shape[1]
    tp = idx.shape[-1]

    # Code iota generated in-kernel (sublane-direction iota is near-free in vregs;
    # avoids a resident multi-MiB int32 input and its per-step re-reads).
    codes = jax.lax.broadcasted_iota(jnp.int32, (nc, tp), 0)       # (NC, TP)

    # One-hot in bf16 (0/1 exact in bf16): halves the materialized intermediate vs f32.
    onehot = (codes == idx).astype(jnp.bfloat16)                   # (NC, TP)

    # Embedding gather as one-hot matmuls on the MXU with f32 accumulation.  For a
    # one-hot RHS every product is 0 or the bf16 chunk value, so each chunk's result is
    # exact; hi + mid + lo reconstructs the f32 table entry (~bit-exact).
    acc = jnp.dot(w_hi_ref[...], onehot, preferred_element_type=jnp.float32)   # (H, TP)
    acc = acc + jnp.dot(w_mid_ref[...], onehot, preferred_element_type=jnp.float32)
    acc = acc + jnp.dot(w_lo_ref[...], onehot, preferred_element_type=jnp.float32)

    # attn_bias[mask_off] = -inf.  Must stay post-matmul (no -inf inside the table).
    out_ref[0] = jnp.where(idx == INF8, jnp.float32(-jnp.inf), acc)


@functools.partial(jax.jit, static_argnames=("max_tile",))
def structural_embedding(attn_bias, lin_w, virt_w, *, max_tile=8192):
    """attn_bias: (B, N, N, 1) integer codes; lin_w: (256, H); virt_w: (G, H) or None.

    Returns (B, H, N+G, N+G) float32, matching the PyTorch forward (permute(0, 3, 1, 2)).
    """
    B, N = attn_bias.shape[0], attn_bias.shape[1]
    H = lin_w.shape[1]
    G = 0 if virt_w is None else virt_w.shape[0]
    M = N + G
    P = M * M

    # ---- tiling: lane-dense flattened spatial axis ------------------------------------
    P128 = _round_up(P, 128)
    TP = min(max_tile, P128)
    n_ptiles = _cdiv(P128, TP)
    # Guarantee >= 2 grid tiles so both v7x TensorCores get work on tiny batch/graph.
    if B * n_ptiles < 2 and P128 >= 256:
        TP = _round_up(_cdiv(P128, 2), 128)
        n_ptiles = _cdiv(P128, TP)
    P_pad = n_ptiles * TP

    # ---- embedding table with virtual-node rows folded in as codes 256..255+G ----------
    NC = _round_up(_NUM_LIN_CODES + G, 16)                 # bf16 sublane-tile aligned
    tbl = jnp.transpose(lin_w).astype(jnp.float32)         # (H, 256), heads-major
    if G > 0:
        tbl = jnp.concatenate(
            [tbl, jnp.transpose(virt_w).astype(jnp.float32)], axis=1)   # (H, 256+G)
    tbl = jnp.pad(tbl, ((0, 0), (0, NC - tbl.shape[1])))   # (H, NC)
    # 3-way bf16 split: hi + mid + lo reconstructs f32 to ~bit-exactness.
    w_hi = tbl.astype(jnp.bfloat16)
    r = tbl - w_hi.astype(jnp.float32)
    w_mid = r.astype(jnp.bfloat16)
    r = r - w_mid.astype(jnp.float32)
    w_lo = r.astype(jnp.bfloat16)

    # ---- flattened, padded code map (virtual rows/cols rewritten to codes >= 256) ------
    idx = attn_bias[..., 0].astype(jnp.int32)              # (B, N, N)
    idx_pad = jnp.pad(idx, ((0, 0), (0, G), (0, G)))       # (B, M, M), tail = code 0
    if G > 0:
        vcodes = jnp.arange(G, dtype=jnp.int32) + _NUM_LIN_CODES
        # Rows i >= N get virtual_bias[i-N]; columns j >= N get virtual_bias[j-N]
        # (columns applied last -> column value wins in the corner, matching PyTorch).
        idx_pad = idx_pad.at[:, N:, :].set(vcodes[None, :, None])
        idx_pad = idx_pad.at[:, :, N:].set(vcodes[None, None, :])
    idx_flat = jnp.pad(idx_pad.reshape(B, P), ((0, 0), (0, P_pad - P)))
    idx_flat = idx_flat.reshape(B, 1, P_pad)

    # ---- Pallas kernel call: 2-D grid (batch, P-tiles), both axes parallel --------------
    out_flat = pl.pallas_call(
        _se_kernel,
        out_shape=jax.ShapeDtypeStruct((B, H, P_pad), jnp.float32),
        grid_spec=pltpu.PrefetchScalarGridSpec(
            num_scalar_prefetch=0,
            grid=(B, n_ptiles),
            in_specs=[
                pl.BlockSpec((1, 1, TP), lambda b, p: (b, 0, p)),     # idx tile
                pl.BlockSpec((H, NC), lambda b, p: (0, 0)),           # w_hi  (resident)
                pl.BlockSpec((H, NC), lambda b, p: (0, 0)),           # w_mid (resident)
                pl.BlockSpec((H, NC), lambda b, p: (0, 0)),           # w_lo  (resident)
            ],
            out_specs=pl.BlockSpec((1, H, TP), lambda b, p: (b, 0, p)),
        ),
        compiler_params=pltpu.CompilerParams(
            dimension_semantics=("parallel", "parallel"),
            vmem_limit_bytes=32 * 1024 * 1024,
        ),
    )(idx_flat, w_hi, w_mid, w_lo)

    # Wrapper epilogue is just slice-off-padding + free reshape (fused under this jit).
    return out_flat[:, :, :P].reshape(B, H, M, M)


def reference_forward(attn_bias, lin_w, virt_w):
    """Pure-JAX replica of the PyTorch forward, for verification."""
    idx = attn_bias[..., 0].astype(jnp.int32)              # (B, N, N)
    B, N = idx.shape[0], idx.shape[1]
    emb = lin_w[idx]                                       # (B, N, N, H)
    emb = jnp.where((idx == INF8)[..., None], -jnp.inf, emb)
    if virt_w is not None and virt_w.shape[0] > 0:
        G = virt_w.shape[0]
        H = lin_w.shape[1]
        vr = jnp.broadcast_to(virt_w[None, :, None, :], (B, G, N, H))
        emb = jnp.concatenate([emb, vr], axis=1)           # (B, N+G, N, H)
        vc = jnp.broadcast_to(virt_w[None, None, :, :], (B, N + G, G, H))
        emb = jnp.concatenate([emb, vc], axis=2)           # (B, N+G, N+G, H)
    return jnp.transpose(emb, (0, 3, 1, 2))                # (B, H, N+G, N+G)


if __name__ == "__main__":
    B, N, H, G = 2, 16, 4, 1   # batch, nodes, num_heads, num_global_node

    key = jax.random.PRNGKey(0)
    k_lin, k_virt, k_idx = jax.random.split(key, 3)

    # nn.Embedding(256, H, padding_idx=255): N(0,1) init, padding row zeroed.
    lin_w = jax.random.normal(k_lin, (INF8 + 1, H), dtype=jnp.float32)
    lin_w = lin_w.at[INF8].set(0.0)
    # nn.Embedding(G, H)
    virt_w = jax.random.normal(k_virt, (G, H), dtype=jnp.float32)

    # attn_bias codes in [0, 255]; force a few 255 entries to exercise the -inf mask.
    attn_bias = jax.random.randint(k_idx, (B, N, N, 1), 0, INF8 + 1, dtype=jnp.int32)
    attn_bias = attn_bias.at[:, 0, 1, 0].set(INF8)
    attn_bias = attn_bias.at[:, 3, 5, 0].set(INF8)

    out = jax.block_until_ready(structural_embedding(attn_bias, lin_w, virt_w))
    ref = jax.block_until_ready(reference_forward(attn_bias, lin_w, virt_w))

    assert out.shape == (B, H, N + G, N + G), out.shape
    assert out.dtype == jnp.float32
    assert np.allclose(np.asarray(out), np.asarray(ref), rtol=1e-5, atol=1e-5), \
        "mismatch vs reference"
    print("KERNEL_OK")
</pallas_src>

<mosaic_0001>
module attributes {stable_mosaic.version = 11 : i64} {
  func.func @_se_kernel(%arg0: i32, %arg1: i32, %arg2: memref<1x1x384xi32, #tpu.memory_space<vmem>>, %arg3: memref<4x272xbf16, #tpu.memory_space<vmem>>, %arg4: memref<4x272xbf16, #tpu.memory_space<vmem>>, %arg5: memref<4x272xbf16, #tpu.memory_space<vmem>>, %arg6: memref<1x4x384xf32, #tpu.memory_space<vmem>>) attributes {dimension_semantics = [#tpu.dimension_semantics<parallel>, #tpu.dimension_semantics<parallel>], iteration_bounds = array<i64: 2, 1>, scalar_prefetch = 0 : i64, scratch_operands = 0 : i64, tpu.core_type = #tpu.core_type<tc>, window_params = [{transform_indices = @transform_0, window_bounds = array<i64: 1, 1, 384>}, {pipeline_mode = #tpu.pipeline_mode<synchronous>, transform_indices = @transform_1, window_bounds = array<i64: 4, 272>}, {pipeline_mode = #tpu.pipeline_mode<synchronous>, transform_indices = @transform_2, window_bounds = array<i64: 4, 272>}, {pipeline_mode = #tpu.pipeline_mode<synchronous>, transform_indices = @transform_3, window_bounds = array<i64: 4, 272>}, {transform_indices = @transform_4, window_bounds = array<i64: 1, 4, 384>}]} {
    %c0 = arith.constant 0 : index
    %c0_0 = arith.constant 0 : index
    %c0_1 = arith.constant 0 : index
    %0 = vector.load %arg2[%c0, %c0_0, %c0_1] : memref<1x1x384xi32, #tpu.memory_space<vmem>>, vector<1x1x384xi32>
    %1 = vector.shape_cast %0 : vector<1x1x384xi32> to vector<1x384xi32>
    %2 = tpu.iota {dimensions = array<i32: 0>} : vector<272x384xi32>
    %3 = vector.broadcast %1 : vector<1x384xi32> to vector<272x384xi32>
    %4 = arith.cmpi eq, %2, %3 : vector<272x384xi32>
    %5 = arith.extui %4 : vector<272x384xi1> to vector<272x384xi32>
    %6 = arith.sitofp %5 : vector<272x384xi32> to vector<272x384xf32>
    %7 = arith.truncf %6 : vector<272x384xf32> to vector<272x384xbf16>
    %c0_2 = arith.constant 0 : index
    %c0_3 = arith.constant 0 : index
    %8 = vector.load %arg3[%c0_2, %c0_3] : memref<4x272xbf16, #tpu.memory_space<vmem>>, vector<4x272xbf16>
    %cst = arith.constant dense<0.000000e+00> : vector<4x384xf32>
    %9 = tpu.matmul %8, %7, %cst {dimension_numbers = #tpu.dot_dimension_numbers<[1], [0], [0], [1], [0, 0, 1, 1], [], []>} : vector<4x272xbf16>, vector<272x384xbf16>, vector<4x384xf32> -> vector<4x384xf32>
    %c0_4 = arith.constant 0 : index
    %c0_5 = arith.constant 0 : index
    %10 = vector.load %arg4[%c0_4, %c0_5] : memref<4x272xbf16, #tpu.memory_space<vmem>>, vector<4x272xbf16>
    %cst_6 = arith.constant dense<0.000000e+00> : vector<4x384xf32>
    %11 = tpu.matmul %10, %7, %cst_6 {dimension_numbers = #tpu.dot_dimension_numbers<[1], [0], [0], [1], [0, 0, 1, 1], [], []>} : vector<4x272xbf16>, vector<272x384xbf16>, vector<4x384xf32> -> vector<4x384xf32>
    %12 = arith.addf %9, %11 : vector<4x384xf32>
    %c0_7 = arith.constant 0 : index
    %c0_8 = arith.constant 0 : index
    %13 = vector.load %arg5[%c0_7, %c0_8] : memref<4x272xbf16, #tpu.memory_space<vmem>>, vector<4x272xbf16>
    %cst_9 = arith.constant dense<0.000000e+00> : vector<4x384xf32>
    %14 = tpu.matmul %13, %7, %cst_9 {dimension_numbers = #tpu.dot_dimension_numbers<[1], [0], [0], [1], [0, 0, 1, 1], [], []>} : vector<4x272xbf16>, vector<272x384xbf16>, vector<4x384xf32> -> vector<4x384xf32>
    %15 = arith.addf %12, %14 : vector<4x384xf32>
    %c255_i32 = arith.constant 255 : i32
    %16 = vector.broadcast %c255_i32 : i32 to vector<1x384xi32>
    %17 = arith.cmpi eq, %1, %16 : vector<1x384xi32>
    %cst_10 = arith.constant 0xFF800000 : f32
    %18 = vector.shape_cast %17 : vector<1x384xi1> to vector<1x384xi1>
    %19 = vector.broadcast %18 : vector<1x384xi1> to vector<4x384xi1>
    %20 = vector.broadcast %cst_10 : f32 to vector<4x384xf32>
    %21 = arith.select %19, %20, %15 : vector<4x384xi1>, vector<4x384xf32>
    %c0_11 = arith.constant 0 : index
    %c0_12 = arith.constant 0 : index
    %c0_13 = arith.constant 0 : index
    %22 = vector.load %arg6[%c0_11, %c0_12, %c0_13] : memref<1x4x384xf32, #tpu.memory_space<vmem>>, vector<1x4x384xf32>
    %23 = vector.shape_cast %22 : vector<1x4x384xf32> to vector<4x384xf32>
    %24 = vector.shape_cast %21 : vector<4x384xf32> to vector<1x4x384xf32>
    tpu.vector_store %arg6[%c0_11, %c0_12, %c0_13], %24 {strides = array<i32>} : memref<1x4x384xf32, #tpu.memory_space<vmem>>, vector<1x4x384xf32>,
    return
  }
  func.func @transform_0(%arg0: i32, %arg1: i32) -> (i32, i32, i32) {
    %c0_i32 = arith.constant 0 : i32
    %c0_i32_0 = arith.constant 0 : i32
    return %arg0, %c0_i32, %arg1 : i32, i32, i32
  }
  func.func @transform_1(%arg0: i32, %arg1: i32) -> (i32, i32) {
    %c0_i32 = arith.constant 0 : i32
    %c0_i32_0 = arith.constant 0 : i32
    %c0_i32_1 = arith.constant 0 : i32
    return %c0_i32, %c0_i32_0 : i32, i32
  }
  func.func @transform_2(%arg0: i32, %arg1: i32) -> (i32, i32) {
    %c0_i32 = arith.constant 0 : i32
    %c0_i32_0 = arith.constant 0 : i32
    %c0_i32_1 = arith.constant 0 : i32
    return %c0_i32, %c0_i32_0 : i32, i32
  }
  func.func @transform_3(%arg0: i32, %arg1: i32) -> (i32, i32) {
    %c0_i32 = arith.constant 0 : i32
    %c0_i32_0 = arith.constant 0 : i32
    %c0_i32_1 = arith.constant 0 : i32
    return %c0_i32, %c0_i32_0 : i32, i32
  }
  func.func @transform_4(%arg0: i32, %arg1: i32) -> (i32, i32, i32) {
    %c0_i32 = arith.constant 0 : i32
    %c0_i32_0 = arith.constant 0 : i32
    return %arg0, %c0_i32, %arg1 : i32, i32, i32
  }
}

</mosaic_0001>

<bundles_post_ra>
// kernel: structural_embedding.1
= control target key start
LH: loop header
LB: loop body
LE: loop exit
PB: predicated region body
PF: predicated region fallthrough
CT: control target
= control target key end

     0   :  { %s1623_s15 = smov 0   ;;  %s1625_s16 = smov 0   ;;  %s2751_s0 = inlined_call_operand.vmem [shape: s32[2,1,384], index: 0, kind: input, shape index: {}]   ;;  %s2752_s1 = inlined_call_operand.vmem [shape: bf16[4,272], index: 1, kind: input, shape index: {}]   ;;  %s2753_s2 = inlined_call_operand.vmem [shape: bf16[4,272], index: 2, kind: input, shape index: {}]   ;;  %s2754_s3 = inlined_call_operand.vmem [shape: bf16[4,272], index: 3, kind: input, shape index: {}]   ;;  %s2755_s4 = inlined_call_operand.vmem [shape: f32[2,4,384], index: 4, kind: output, shape index: {}]  }
   0x1   :  { %s1627_s17 = smov 0  }
   0x2 LB: > { %s26_s18 = sadd.s32 1, %s1590_s16  ;;  %p1123_p0 = scmp.ge.s32.totalorder %s1594_s17, 1  ;;  %s1594_s17 = sphi %s1627_s17, %s14_s17   ;;  %s1590_s16 = sphi %s1625_s16, %s3073_s16   ;;  %s1586_s15 = sphi %s1623_s15, %s3072_s15  }
   0x3   : > { %p28_p1 = scmp.ge.s32.totalorder %s26_s18, 2  ;;  %p182_p2 = scmp.lt.s32.totalorder %s1594_s17, 3 }
   0x5   : > { %s3075_s18 = smov (%p28_p1, %s26_s18), 0  ;;  %p183_p3 = pnand %p1123_p0, %p182_p2 }
   0x7   : > { %186 = sbr.rel (%p183_p3) target bundleno = 329 (0x149), region = 36 }
   0xc   : > { %p216_p4 = scmp.lt.s32.totalorder %s1586_s15, 1  ;;  %v236_v0 = vlaneseq  ;;  %v632_v1 = vld [vmem:[%s2753_s2] sm:$0x3f]  ;;  %v2861_v16 = vmov 0  ;;  %v1596_v17 = vmov 1.0|1.0  }
   0xd   : > { %634 = vst [vmem:[#allocation1] ss:$4 sm:$0xff] %v632_v1  ;;  %v2863_v18 = vmov 0  ;;  %v2865_v19 = vmov 0  ;;  %v2867_v22 = vmov 0  ;;  %v2869_v25 = vmov 0 }
   0xe   : > { %s3077_s15 = smov (!%p216_p4, %s1586_s15), 1  ;;  %v1646_v2 = vshrl.u32 %v236_v0, 7  ;;  %v2871_v27 = vmov 0  ;;  %v2873_v28 = vmov 0  ;;  %v631_v31 = vld [vmem:[%s2752_s1] sm:$0x3f] }
   0xf   : > { %s1544_s21 = smul.u32 3, %s3077_s15  ;;  %v2875_v32 = vmov 0  ;;  %v2877_v35 = vmov 0  ;;  %v2880_v38 = vmov 0  ;;  %v2882_v39 = vmov 0 }
  0x10   : > { %v1653_v3 = vadd.s32 112, %v1646_v2  ;;  %v1656_v4 = vadd.s32 120, %v1646_v2  ;;  %v1659_v5 = vadd.s32 240, %v1646_v2  ;;  %v1662_v6 = vadd.s32 248, %v1646_v2  ;;  %s1545_s29 = smul.u32 12, %s3077_s15 }
  0x11   : > { %s222_s24 = scalar_lea.vmem %s2751_s0, %s1544_s21  ;;  %v1667_v8 = vadd.s32 256, %v1646_v2  ;;  %v1670_v9 = vadd.s32 264, %v1646_v2  ;;  %v1679_v12 = vadd.s32 96, %v1646_v2  ;;  %v1682_v13 = vadd.s32 104, %v1646_v2 }
  0x12   : > { %v1664_v7 = vld [vmem:[%s222_s24] sm:$0x7]  ;;  %v1685_v14 = vadd.s32 224, %v1646_v2  ;;  %v1688_v15 = vadd.s32 232, %v1646_v2  ;;  %v1733_v20 = vadd.s32 80, %v1646_v2  ;;  %v1736_v21 = vadd.s32 88, %v1646_v2  ;;  %s232_s6 = scalar_lea.vmem %s2755_s4, %s1545_s29 }
  0x13   : > { %2860 = vst [vmem:[#allocation2_spill] sm:$0xff] %v1664_v7  ;;  %v1673_v10 = vperm.slane %v1664_v7, 0  ;;  %v1676_v11 = vperm.slane %v1664_v7, 1  ;;  %v1750_v23 = vadd.s32 208, %v1646_v2  ;;  %v1753_v24 = vadd.s32 216, %v1646_v2 }
  0x14   : > { %v1769_v26 = vld.sshfl [vmem:[#allocation1 + $0x10] sm:$0xff pattern:$0x73625140]  ;;  %v1803_v29 = vadd.s32 64, %v1646_v2  ;;  %v1806_v30 = vadd.s32 72, %v1646_v2  ;;  %v1829_v33 = vadd.s32 192, %v1646_v2 }
  0x15   : > { %vm316_vm0 = vcmp.eq.s32.totalorder %v1653_v3, %v1673_v10  ;;  %vm319_vm1 = vcmp.eq.s32.totalorder %v1656_v4, %v1673_v10  ;;  %vm364_vm2 = vcmp.eq.s32.totalorder %v1659_v5, %v1673_v10  ;;  %vm367_vm3 = vcmp.eq.s32.totalorder %v1662_v6, %v1673_v10  ;;  %v1853_v36 = vld.sshfl [vmem:[#allocation1] sm:$0xff pattern:$0x73625140]  ;;  %v1855_v37 = vld.sshfl [vmem:[#allocation1 + $0x8] sm:$0xff pattern:$0x73625140] }
  0x16   : > { %vm1698_vm4 = vmpackc.low %vm319_vm1, %vm316_vm0  ;;  %vm370_vm5 = vcmp.eq.s32.totalorder %v1667_v8, %v1673_v10  ;;  %vm373_vm6 = vcmp.eq.s32.totalorder %v1670_v9, %v1673_v10  ;;  %vm317_vm7 = vcmp.eq.s32.totalorder %v1653_v3, %v1676_v11  ;;  %vm320_vm8 = vcmp.eq.s32.totalorder %v1656_v4, %v1676_v11  ;;  %761 = vst [vmem:[#allocation1] ss:$4 sm:$0xff] %v631_v31 }
  0x17   : > { %v2862_v16 = vsel %vm1698_vm4, 4294967295, %v2861_v16  ;;  %1228 = vmatpush.bf16.msk.msra.mxu0 %vm1698_vm4, %v1596_v17  ;;  %vm1713_vm9 = vmpackc.low %vm367_vm3, %vm364_vm2  ;;  %vm365_vm10 = vcmp.eq.s32.totalorder %v1659_v5, %v1676_v11  ;;  %vm368_vm11 = vcmp.eq.s32.totalorder %v1662_v6, %v1676_v11  ;;  %vm310_vm13 = vcmp.eq.s32.totalorder %v1679_v12, %v1673_v10 }
  0x18   : > { %v2864_v18 = vsel %vm1713_vm9, 4294967295, %v2863_v18  ;;  %1244 = vmatpush.bf16.msk.msra.mxu1 %vm1713_vm9, %v1596_v17  ;;  %vm1724_vm12 = vmpackc.low %vm373_vm6, %vm370_vm5  ;;  %vm313_vm14 = vcmp.eq.s32.totalorder %v1682_v13, %v1673_v10  ;;  %vm358_vm0 = vcmp.eq.s32.totalorder %v1685_v14, %v1673_v10  ;;  %vm361_vm1 = vcmp.eq.s32.totalorder %v1688_v15, %v1673_v10 }
  0x19   : > { %v2866_v19 = vsel %vm1724_vm12, 4294967295, %v2865_v19  ;;  %1260 = vmatpush.bf16.msk.msra.mxu2 %vm1724_vm12, %v1596_v17  ;;  %vm1741_vm15 = vmpackc.low %vm320_vm8, %vm317_vm7  ;;  %vm311_vm3 = vcmp.eq.s32.totalorder %v1679_v12, %v1676_v11  ;;  %vm314_vm5 = vcmp.eq.s32.totalorder %v1682_v13, %v1676_v11  ;;  %vm2756_vm6 = vcmask 130048  }
  0x1a   : > { %v2868_v22 = vsel %vm1741_vm15, 4294967295, %v2867_v22  ;;  %1263 = vmatpush.bf16.msk.msra.mxu3 %vm1741_vm15, %v1596_v17  ;;  %vm1761_vm2 = vmpackc.low %vm368_vm11, %vm365_vm10  ;;  %vm359_vm8 = vcmp.eq.s32.totalorder %v1685_v14, %v1676_v11  ;;  %vm362_vm10 = vcmp.eq.s32.totalorder %v1688_v15, %v1676_v11  ;;  %v1832_v34 = vadd.s32 200, %v1646_v2 }
  0x1b   : > { %v2870_v25 = vsel %vm1761_vm2, 4294967295, %v2869_v25  ;;  %vm1780_vm7 = vmpackc.low %vm313_vm14, %vm310_vm13  ;;  %vm304_vm13 = vcmp.eq.s32.totalorder %v1733_v20, %v1673_v10  ;;  %vm355_vm14 = vcmp.eq.s32.totalorder %v1753_v24, %v1673_v10  ;;  %v1892_v40 = vadd.s32 48, %v1646_v2 }
  0x1c   : > { %v2872_v27 = vsel %vm1780_vm7, 4294967295, %v2871_v27  ;;  %1230 = vmatpush.bf16.msk.msra.mxu0 %vm1780_vm7, %v1596_v17  ;;  %vm1794_vm11 = vmpackc.low %vm361_vm1, %vm358_vm0  ;;  %vm352_vm1 = vcmp.eq.s32.totalorder %v1750_v23, %v1673_v10  ;;  %1261 = vmatmul.msk.bf16.vlgmr.msra.gmra.mxu2 %vm2756_vm6, %v1769_v26  ;;  %v1895_v41 = vadd.s32 56, %v1646_v2  ;;  %v2886_v42 = vmov 0 }
  0x1d   : > { %1279 = vmatpush.bf16.msk.msrb.mxu2 %vm1761_vm2, %v1596_v17  ;;  %v2874_v28 = vsel %vm1794_vm11, 4294967295, %v2873_v28  ;;  %1246 = vmatpush.bf16.msk.msra.mxu1 %vm1794_vm11, %v1596_v17  ;;  %vm1820_vm0 = vmpackc.low %vm314_vm5, %vm311_vm3  ;;  %vm301_vm5 = vcmp.eq.s32.totalorder %v1806_v30, %v1673_v10  ;;  %vm346_vm6 = vcmp.eq.s32.totalorder %v1829_v33, %v1673_v10  ;;  %v1915_v43 = vadd.s32 176, %v1646_v2 }
  0x1e   : > { %v2876_v32 = vsel %vm1820_vm0, 4294967295, %v2875_v32  ;;  %1265 = vmatpush.bf16.msk.msra.mxu3 %vm1820_vm0, %v1596_v17  ;;  %vm1845_vm3 = vmpackc.low %vm362_vm10, %vm359_vm8  ;;  %vm2879_vm8 = vcmp.eq.s32.totalorder %v1736_v21, %v1673_v10  ;;  %vm349_vm0 = vcmp.eq.s32.totalorder %v1832_v34, %v1673_v10  ;;  %v1918_v44 = vadd.s32 184, %v1646_v2 }
  0x1f   : > { %v2878_v35 = vsel %vm1845_vm3, 4294967295, %v2877_v35  ;;  %vm1866_vm10 = vmpackc.low %vm2879_vm8, %vm304_vm13  ;;  %v2890_v45 = vmov 0  ;;  %vm299_vm12 = vcmp.eq.s32.totalorder %v1803_v29, %v1676_v11  ;;  %vm302_vm15 = vcmp.eq.s32.totalorder %v1806_v30, %v1676_v11 }
  0x20   : > { %v2881_v38 = vsel %vm1866_vm10, 4294967295, %v2880_v38  ;;  %1232 = vmatpush.bf16.msk.msra.mxu0 %vm1866_vm10, %v1596_v17  ;;  %vm1883_vm13 = vmpackc.low %vm355_vm14, %vm352_vm1  ;;  %vm2884_vm14 = vcmp.eq.s32.totalorder %v1733_v20, %v1676_v11  ;;  %vm2885_vm1 = vcmp.eq.s32.totalorder %v1736_v21, %v1676_v11  ;;  %v2893_v46 = vmov 0 }
  0x21   : > { %1281 = vmatpush.bf16.msk.msrb.mxu2 %vm1845_vm3, %v1596_v17  ;;  %v2883_v39 = vsel %vm1883_vm13, 4294967295, %v2882_v39  ;;  %1248 = vmatpush.bf16.msk.msra.mxu1 %vm1883_vm13, %v1596_v17  ;;  %vm1906_vm8 = vmpackc.low %vm2885_vm1, %vm2884_vm14  ;;  %vm2888_vm14 = vcmp.eq.s32.totalorder %v1750_v23, %v1676_v11  ;;  %vm2889_vm1 = vcmp.eq.s32.totalorder %v1753_v24, %v1676_v11  ;;  %v2895_v47 = vmov 0 }
  0x22   : > { %v2887_v42 = vsel %vm1906_vm8, 4294967295, %v2886_v42  ;;  %1267 = vmatpush.bf16.msk.msra.mxu3 %vm1906_vm8, %v1596_v17  ;;  %vm1929_vm3 = vmpackc.low %vm2889_vm1, %vm2888_vm14  ;;  %vm2892_vm8 = vcmp.eq.s32.totalorder %v1803_v29, %v1673_v10  ;;  %vm347_vm14 = vcmp.eq.s32.totalorder %v1829_v33, %v1676_v11  ;;  %vm350_vm1 = vcmp.eq.s32.totalorder %v1832_v34, %v1676_v11 }
  0x23   : > { %v2891_v45 = vsel %vm1929_vm3, 4294967295, %v2890_v45  ;;  %vm1943_vm2 = vmpackc.low %vm301_vm5, %vm2892_vm8  ;;  %vm295_vm8 = vcmp.eq.s32.totalorder %v1895_v41, %v1673_v10  ;;  %v1963_v48 = vadd.s32 32, %v1646_v2  ;;  %v1966_v49 = vadd.s32 40, %v1646_v2 }
  0x24   : > { %v2894_v46 = vsel %vm1943_vm2, 4294967295, %v2893_v46  ;;  %1234 = vmatpush.bf16.msk.msra.mxu0 %vm1943_vm2, %v1596_v17  ;;  %vm1954_vm13 = vmpackc.low %vm349_vm0, %vm346_vm6  ;;  %v2897_v50 = vmov 0  ;;  %vm340_vm0 = vcmp.eq.s32.totalorder %v1915_v43, %v1673_v10  ;;  %vm343_vm5 = vcmp.eq.s32.totalorder %v1918_v44, %v1673_v10 }
  0x25   : > { %1283 = vmatpush.bf16.msk.msrb.mxu2 %vm1929_vm3, %v1596_v17  ;;  %v2896_v47 = vsel %vm1954_vm13, 4294967295, %v2895_v47  ;;  %1250 = vmatpush.bf16.msk.msra.mxu1 %vm1954_vm13, %v1596_v17  ;;  %vm1971_vm6 = vmpackc.low %vm302_vm15, %vm299_vm12  ;;  %v1980_v51 = vadd.s32 160, %v1646_v2  ;;  %v1983_v52 = vadd.s32 168, %v1646_v2  ;;  %v2900_v53 = vmov 0 }
  0x26   : > { %v2898_v50 = vsel %vm1971_vm6, 4294967295, %v2897_v50  ;;  %1269 = vmatpush.bf16.msk.msra.mxu3 %vm1971_vm6, %v1596_v17  ;;  %vm1991_vm12 = vmpackc.low %vm350_vm1, %vm347_vm14  ;;  %vm293_vm15 = vcmp.eq.s32.totalorder %v1892_v40, %v1676_v11  ;;  %vm296_vm3 = vcmp.eq.s32.totalorder %v1895_v41, %v1676_v11  ;;  %vm2903_vm6 = vcmp.eq.s32.totalorder %v1892_v40, %v1673_v10 }
  0x27   : > { %2899 = vst [vmem:[#allocation3_spill] sm:$0xff] %v2898_v50  ;;  %v2901_v53 = vsel %vm1991_vm12, 4294967295, %v2900_v53  ;;  %vm2005_vm13 = vmpackc.low %vm295_vm8, %vm2903_vm6  ;;  %v2904_v54 = vmov 0  ;;  %vm341_vm14 = vcmp.eq.s32.totalorder %v1915_v43, %v1676_v11  ;;  %vm344_vm1 = vcmp.eq.s32.totalorder %v1918_v44, %v1676_v11 }
  0x28   : > { %2902 = vst [vmem:[#allocation4_spill] sm:$0xff] %v2901_v53  ;;  %v2905_v54 = vsel %vm2005_vm13, 4294967295, %v2904_v54  ;;  %1236 = vmatpush.bf16.msk.msra.mxu0 %vm2005_vm13, %v1596_v17  ;;  %vm2016_vm11 = vmpackc.low %vm343_vm5, %vm340_vm0  ;;  %v2906_v55 = vmov 0  ;;  %vm289_vm6 = vcmp.eq.s32.totalorder %v1966_v49, %v1673_v10  ;;  %v2025_v56 = vadd.s32 16, %v1646_v2 }
  0x29   : > { %1285 = vmatpush.bf16.msk.msrb.mxu2 %vm1991_vm12, %v1596_v17  ;;  %v2907_v55 = vsel %vm2016_vm11, 4294967295, %v2906_v55  ;;  %v2028_v57 = vadd.s32 24, %v1646_v2  ;;  %1252 = vmatpush.bf16.msk.msra.mxu1 %vm2016_vm11, %v1596_v17  ;;  %vm2033_vm5 = vmpackc.low %vm296_vm3, %vm293_vm15  ;;  %v2908_v58 = vmov 0  ;;  %vm334_vm0 = vcmp.eq.s32.totalorder %v1980_v51, %v1673_v10 }
  0x2a   : > { %v2909_v58 = vsel %vm2033_vm5, 4294967295, %v2908_v58  ;;  %vm337_vm8 = vcmp.eq.s32.totalorder %v1983_v52, %v1673_v10  ;;  %v2042_v59 = vadd.s32 144, %v1646_v2  ;;  %v2045_v60 = vadd.s32 152, %v1646_v2  ;;  %1271 = vmatpush.bf16.msk.msra.mxu3 %vm2033_vm5, %v1596_v17  ;;  %vm2053_vm3 = vmpackc.low %vm344_vm1, %vm341_vm14 }
  0x2b   : > { %2910 = vst [vmem:[#allocation5_spill] sm:$0xff] %v2909_v58  ;;  %v2911_v61 = vmov 0  ;;  %vm287_vm15 = vcmp.eq.s32.totalorder %v1963_v48, %v1676_v11  ;;  %vm290_vm12 = vcmp.eq.s32.totalorder %v1966_v49, %v1676_v11  ;;  %vm2914_vm5 = vcmp.eq.s32.totalorder %v1963_v48, %v1673_v10  ;;  %vm2078_vm9 = vmpackc.low %vm337_vm8, %vm334_vm0 }
  0x2c   : > { %v2912_v61 = vsel %vm2053_vm3, 4294967295, %v2911_v61  ;;  %vm2067_vm11 = vmpackc.low %vm289_vm6, %vm2914_vm5  ;;  %v2915_v62 = vmov 0  ;;  %vm335_vm14 = vcmp.eq.s32.totalorder %v1980_v51, %v1676_v11  ;;  %vm338_vm1 = vcmp.eq.s32.totalorder %v1983_v52, %v1676_v11 }
  0x2d   : > { %2913 = vst [vmem:[#allocation6_spill] sm:$0xff] %v2912_v61  ;;  %1287 = vmatpush.bf16.msk.msrb.mxu2 %vm2053_vm3, %v1596_v17  ;;  %v2916_v62 = vsel %vm2067_vm11, 4294967295, %v2915_v62  ;;  %1238 = vmatpush.bf16.msk.msra.mxu0 %vm2067_vm11, %v1596_v17  ;;  %v2917_v63 = vmov 0  ;;  %vm280_vm6 = vcmp.eq.s32.totalorder %v2025_v56, %v1673_v10  ;;  %vm283_vm5 = vcmp.eq.s32.totalorder %v2028_v57, %v1673_v10  ;;  %vm2092_vm3 = vmpackc.low %vm290_vm12, %vm287_vm15 }
  0x2e   : > { %v2918_v63 = vsel %vm2078_vm9, 4294967295, %v2917_v63  ;;  %v2087_v0 = vadd.s32 8, %v1646_v2  ;;  %1254 = vmatpush.bf16.msk.msra.mxu1 %vm2078_vm9, %v1596_v17  ;;  %v2919_v1 = vmov 0  ;;  %vm328_vm8 = vcmp.eq.s32.totalorder %v2042_v59, %v1673_v10  ;;  %1273 = vmatpush.bf16.msk.msra.mxu3 %vm2092_vm3, %v1596_v17  ;;  %vm2109_vm12 = vmpackc.low %vm338_vm1, %vm335_vm14 }
  0x2f   : > { %v2920_v1 = vsel %vm2092_vm3, 4294967295, %v2919_v1  ;;  %vm331_vm0 = vcmp.eq.s32.totalorder %v2045_v60, %v1673_v10  ;;  %v2101_v31 = vadd.s32 128, %v1646_v2  ;;  %v2104_v58 = vadd.s32 136, %v1646_v2  ;;  %vm2120_vm11 = vmpackc.low %vm283_vm5, %vm280_vm6 }
  0x30   : > { %2921 = vst [vmem:[#allocation7_spill] sm:$0xff] %v2920_v1  ;;  %v2922_v61 = vmov 0  ;;  %vm281_vm15 = vcmp.eq.s32.totalorder %v2025_v56, %v1676_v11  ;;  %vm284_vm9 = vcmp.eq.s32.totalorder %v2028_v57, %v1676_v11  ;;  %v2925_v50 = vmov 0  ;;  %vm2131_vm3 = vmpackc.low %vm331_vm0, %vm328_vm8 }
  0x31   : > { %v2923_v61 = vsel %vm2109_vm12, 4294967295, %v2922_v61  ;;  %1289 = vmatpush.bf16.msk.msrb.mxu2 %vm2109_vm12, %v1596_v17  ;;  %v2926_v50 = vsel %vm2120_vm11, 4294967295, %v2925_v50  ;;  %vm329_vm14 = vcmp.eq.s32.totalorder %v2042_v59, %v1676_v11  ;;  %vm332_vm1 = vcmp.eq.s32.totalorder %v2045_v60, %v1676_v11  ;;  %1240 = vmatpush.bf16.msk.msra.mxu0 %vm2120_vm11, %v1596_v17  ;;  %vm2145_vm12 = vmpackc.low %vm284_vm9, %vm281_vm15 }
  0x32   : > { %2924 = vst [vmem:[#allocation8_spill] sm:$0xff] %v2923_v61  ;;  %v2927_v1 = vmov 0  ;;  %vm274_vm6 = vcmp.eq.s32.totalorder %v1646_v2, %v1673_v10  ;;  %vm277_vm5 = vcmp.eq.s32.totalorder %v2087_v0, %v1673_v10  ;;  %v2140_v61 = vperm.slane %v1664_v7, 2  ;;  %1256 = vmatpush.bf16.msk.msra.mxu1 %vm2131_vm3, %v1596_v17  ;;  %1275 = vmatpush.bf16.msk.msra.mxu3 %vm2145_vm12, %v1596_v17  ;;  %vm2156_vm11 = vmpackc.low %vm332_vm1, %vm329_vm14 }
  0x33   : > { %v2928_v1 = vsel %vm2131_vm3, 4294967295, %v2927_v1  ;;  %v2929_v53 = vmov 0  ;;  %vm322_vm8 = vcmp.eq.s32.totalorder %v2101_v31, %v1673_v10  ;;  %vm325_vm0 = vcmp.eq.s32.totalorder %v2104_v58, %v1673_v10  ;;  %vm2167_vm3 = vmpackc.low %vm277_vm5, %vm274_vm6 }
  0x34   : > { %v2930_v53 = vsel %vm2145_vm12, 4294967295, %v2929_v53  ;;  %v2932_v7 = vmov 0  ;;  %vm275_vm9 = vcmp.eq.s32.totalorder %v1646_v2, %v1676_v11  ;;  %vm278_vm15 = vcmp.eq.s32.totalorder %v2087_v0, %v1676_v11  ;;  %vm2178_vm12 = vmpackc.low %vm325_vm0, %vm322_vm8 }
  0x35   : > { %2931 = vst [vmem:[#allocation9_spill] sm:$0xff] %v2930_v53  ;;  %v2933_v7 = vsel %vm2156_vm11, 4294967295, %v2932_v7  ;;  %1291 = vmatpush.bf16.msk.msrb.mxu2 %vm2156_vm11, %v1596_v17  ;;  %v2935_v10 = vmov 0  ;;  %vm323_vm14 = vcmp.eq.s32.totalorder %v2101_v31, %v1676_v11  ;;  %vm326_vm1 = vcmp.eq.s32.totalorder %v2104_v58, %v1676_v11  ;;  %1242 = vmatpush.bf16.msk.msra.mxu0 %vm2167_vm3, %v1596_v17  ;;  %vm2189_vm11 = vmpackc.low %vm278_vm15, %vm275_vm9 }
  0x36   : > { %2934 = vst [vmem:[#allocation10_spill] sm:$0xff] %v2933_v7  ;;  %v2936_v10 = vsel %vm2167_vm3, 4294967295, %v2935_v10  ;;  %v2937_v53 = vmov 0  ;;  %vm318_vm6 = vcmp.eq.s32.totalorder %v1653_v3, %v2140_v61  ;;  %vm321_vm5 = vcmp.eq.s32.totalorder %v1656_v4, %v2140_v61  ;;  %1258 = vmatpush.bf16.msk.msra.mxu1 %vm2178_vm12, %v1596_v17  ;;  %1277 = vmatpush.bf16.msk.msra.mxu3 %vm2189_vm11, %v1596_v17  ;;  %vm2203_vm3 = vmpackc.low %vm326_vm1, %vm323_vm14 }
  0x37   : > { %v2938_v53 = vsel %vm2178_vm12, 4294967295, %v2937_v53  ;;  %v2939_v7 = vmov 0  ;;  %vm366_vm8 = vcmp.eq.s32.totalorder %v1659_v5, %v2140_v61  ;;  %vm369_vm0 = vcmp.eq.s32.totalorder %v1662_v6, %v2140_v61  ;;  %vm2214_vm12 = vmpackc.low %vm321_vm5, %vm318_vm6 }
  0x38   : > { %v2940_v7 = vsel %vm2189_vm11, 4294967295, %v2939_v7  ;;  %v2941_v3 = vmov 0  ;;  %vm312_vm9 = vcmp.eq.s32.totalorder %v1679_v12, %v2140_v61  ;;  %vm315_vm15 = vcmp.eq.s32.totalorder %v1682_v13, %v2140_v61  ;;  %651 = vmatmul.bf16.vlgmr.msra.gmra.mxu0 %v1853_v36 }
  0x39   : > { %1333 = vmatpush.bf16.msk.msrb.mxu0 %vm1698_vm4, %v1596_v17  ;;  %v2942_v3 = vsel %vm2203_vm3, 4294967295, %v2941_v3  ;;  %1293 = vmatpush.bf16.msk.msrb.mxu2 %vm2203_vm3, %v1596_v17  ;;  %v2943_v4 = vmov 0  ;;  %vm360_vm14 = vcmp.eq.s32.totalorder %v1685_v14, %v2140_v61  ;;  %vm363_vm1 = vcmp.eq.s32.totalorder %v1688_v15, %v2140_v61  ;;  %vm2226_vm4 = vmpackc.low %vm369_vm0, %vm366_vm8 }
  0x3a   : > { %v2944_v4 = vsel %vm2214_vm12, 4294967295, %v2943_v4  ;;  %1298 = vmatpush.bf16.msk.msrb.mxu1 %vm2214_vm12, %v1596_v17  ;;  %v2945_v5 = vmov 0  ;;  %1314 = vmatpush.bf16.msk.msrb.mxu3 %vm2226_vm4, %v1596_v17  ;;  %vm2234_vm6 = vmpackc.low %vm315_vm15, %vm312_vm9  ;;  %v2947_v6 = vmov 0  ;;  %v2949_v12 = vmov 0 }
  0x3b   : > { %v2946_v5 = vsel %vm2226_vm4, 4294967295, %v2945_v5  ;;  %664 = vmatmul.bf16.vlgmr.msra.gmra.mxu1 %v1855_v37  ;;  %v2948_v6 = vsel %vm2234_vm6, 4294967295, %v2947_v6  ;;  %vm2239_vm5 = vmpackc.low %vm363_vm1, %vm360_vm14  ;;  %vm306_vm8 = vcmp.eq.s32.totalorder %v1733_v20, %v2140_v61  ;;  %vm309_vm0 = vcmp.eq.s32.totalorder %v1736_v21, %v2140_v61  ;;  %690 = vmatmul.bf16.vlgmr.msra.gmra.mxu3 %v1853_v36 }
  0x3c   : > { %703 = vmatmul.bf16.vlgmr.msrb.gmra.mxu2 %v1855_v37  ;;  %v2950_v12 = vsel %vm2239_vm5, 4294967295, %v2949_v12  ;;  %vm354_vm9 = vcmp.eq.s32.totalorder %v1750_v23, %v2140_v61  ;;  %vm357_vm15 = vcmp.eq.s32.totalorder %v1753_v24, %v2140_v61  ;;  %vm371_vm14 = vcmp.eq.s32.totalorder %v1667_v8, %v1676_v11  ;;  %v2362_v24 = vld.sshfl [vmem:[#allocation1] sm:$0xff pattern:$0x73625140] }
  0x3d   : > { %1335 = vmatpush.bf16.msk.msrb.mxu0 %vm1780_vm7, %v1596_v17  ;;  %vm374_vm1 = vcmp.eq.s32.totalorder %v1670_v9, %v1676_v11  ;;  %vm2265_vm7 = vmpackc.low %vm309_vm0, %vm306_vm8  ;;  %vm300_vm11 = vcmp.eq.s32.totalorder %v1803_v29, %v2140_v61  ;;  %vm303_vm3 = vcmp.eq.s32.totalorder %v1806_v30, %v2140_v61  ;;  %v2953_v14 = vmov 0  ;;  %v2364_v29 = vld.sshfl [vmem:[#allocation1 + $0x10] sm:$0xff pattern:$0x73625140] }
  0x3e   : > { %1300 = vmatpush.bf16.msk.msrb.mxu1 %vm2234_vm6, %v1596_v17  ;;  %1316 = vmatpush.bf16.msk.msrb.mxu3 %vm2239_vm5, %v1596_v17  ;;  %vm2273_vm6 = vmpackc.low %vm357_vm15, %vm354_vm9  ;;  %vm348_vm8 = vcmp.eq.s32.totalorder %v1829_v33, %v2140_v61  ;;  %vm351_vm0 = vcmp.eq.s32.totalorder %v1832_v34, %v2140_v61  ;;  %v2955_v11 = vmov 0  ;;  %vm372_vm9 = vcmp.eq.s32.totalorder %v1667_v8, %v2140_v61  ;;  %v2379_v33 = vld.sshfl [vmem:[#allocation1 + $0x8] sm:$0xff pattern:$0x73625140]  ;;  %v886_v34 = vld [vmem:[%s2754_s3] sm:$0x3f] }
  0x3f   : > { %v2954_v14 = vsel %vm2273_vm6, 4294967295, %v2953_v14  ;;  %vm2284_vm5 = vmpackc.low %vm374_vm1, %vm371_vm14  ;;  %vm375_vm15 = vcmp.eq.s32.totalorder %v1670_v9, %v2140_v61  ;;  %v2957_v15 = vmov 0  ;;  %v2959_v8 = vmov 0  ;;  %888 = vst [vmem:[#allocation1] ss:$4 sm:$0xff] %v886_v34 }
  0x40   : > { %v2956_v11 = vsel %vm2284_vm5, 4294967295, %v2955_v11  ;;  %1295 = vmatpush.bf16.msk.msra.mxu2 %vm2284_vm5, %v1596_v17  ;;  %vm2305_vm14 = vmpackc.low %vm351_vm0, %vm348_vm8  ;;  %v2961_v9 = vmov 0  ;;  %vm342_vm8 = vcmp.eq.s32.totalorder %v1915_v43, %v2140_v61  ;;  %vm345_vm0 = vcmp.eq.s32.totalorder %v1918_v44, %v2140_v61  ;;  %v3004_v44 = vld [vmem:[#allocation5_spill] sm:$0xff] }
  0x41   : > { %1337 = vmatpush.bf16.msk.msrb.mxu0 %vm1866_vm10, %v1596_v17  ;;  %vm2295_vm10 = vmpackc.low %vm303_vm3, %vm300_vm11  ;;  %v2960_v8 = vsel %vm2305_vm14, 4294967295, %v2959_v8  ;;  %vm294_vm11 = vcmp.eq.s32.totalorder %v1892_v40, %v2140_v61  ;;  %vm297_vm3 = vcmp.eq.s32.totalorder %v1895_v41, %v2140_v61  ;;  %v2963_v20 = vmov 0 }
  0x42   : > { %1302 = vmatpush.bf16.msk.msrb.mxu1 %vm2265_vm7, %v1596_v17  ;;  %v2958_v15 = vsel %vm2295_vm10, 4294967295, %v2957_v15  ;;  %1318 = vmatpush.bf16.msk.msrb.mxu3 %vm2273_vm6, %v1596_v17  ;;  %vm2316_vm1 = vmpackc.low %vm375_vm15, %vm372_vm9  ;;  %v2965_v21 = vmov 0  ;;  %v2967_v23 = vmov 0  ;;  %v2970_v30 = vmov 0 }
  0x43   : > { %v2962_v9 = vsel %vm2316_vm1, 4294967295, %v2961_v9  ;;  %vm2333_vm9 = vmpackc.low %vm297_vm3, %vm294_vm11  ;;  %vm336_vm11 = vcmp.eq.s32.totalorder %v1980_v51, %v2140_v61  ;;  %vm339_vm3 = vcmp.eq.s32.totalorder %v1983_v52, %v2140_v61  ;;  %v2974_v40 = vmov 0  ;;  %v3014_v51 = vld [vmem:[#allocation10_spill] sm:$0xff]  ;;  %v3016_v52 = vld [vmem:[#allocation9_spill] sm:$0xff] }
  0x44   : > { %1330 = vmatpush.bf16.msk.msrb.mxu2 %vm2316_vm1, %v1596_v17  ;;  %v2964_v20 = vsel %vm2333_vm9, 4294967295, %v2963_v20  ;;  %vm2337_vm15 = vmpackc.low %vm345_vm0, %vm342_vm8  ;;  %vm2969_vm0 = vcmask 130048   ;;  %v2982_v43 = vmov 0 }
  0x45   : > { %1339 = vmatpush.bf16.msk.msrb.mxu0 %vm1943_vm2, %v1596_v17  ;;  %v2966_v21 = vsel %vm2337_vm15, 4294967295, %v2965_v21  ;;  %vm288_vm2 = vcmp.eq.s32.totalorder %v1963_v48, %v2140_v61  ;;  %v3008_v48 = vld [vmem:[#allocation8_spill] sm:$0xff] }
  0x46   : > { %1304 = vmatpush.bf16.msk.msrb.mxu1 %vm2295_vm10, %v1596_v17  ;;  %1320 = vmatpush.bf16.msk.msrb.mxu3 %vm2305_vm14, %v1596_v17  ;;  %vm291_vm10 = vcmp.eq.s32.totalorder %v1966_v49, %v2140_v61  ;;  %vm276_vm14 = vcmp.eq.s32.totalorder %v1646_v2, %v2140_v61  ;;  %v2980_v2 = vmov 0  ;;  %v3010_v49 = vld [vmem:[#allocation7_spill] sm:$0xff] }
  0x47   : > { %vm2358_vm8 = vmpackc.low %vm291_vm10, %vm288_vm2  ;;  %vm282_vm2 = vcmp.eq.s32.totalorder %v2025_v56, %v2140_v61  ;;  %vm285_vm10 = vcmp.eq.s32.totalorder %v2028_v57, %v2140_v61 }
  0x48   : > { %v2968_v23 = vsel %vm2358_vm8, 4294967295, %v2967_v23 }
  0x49   : > { %1341 = vmatpush.bf16.msk.msrb.mxu0 %vm2005_vm13, %v1596_v17  ;;  %vm2368_vm13 = vmpackc.low %vm339_vm3, %vm336_vm11  ;;  %vm2973_vm11 = vnez %v2864_v18  ;;  %vm330_vm3 = vcmp.eq.s32.totalorder %v2042_v59, %v2140_v61 }
  0x4a   : > { %1306 = vmatpush.bf16.msk.msrb.mxu1 %vm2333_vm9, %v1596_v17  ;;  %1322 = vmatpush.bf16.msk.msrb.mxu3 %vm2337_vm15, %v1596_v17  ;;  %v2971_v30 = vsel %vm2368_vm13, 4294967295, %v2970_v30  ;;  %vm2972_vm9 = vnez %v2916_v62 }
  0x4c   : > { %1296 = vmatmul.msk.bf16.vlgmr.msra.gmra.mxu2 %vm2969_vm0, %v1769_v26  ;;  %vm333_vm0 = vcmp.eq.s32.totalorder %v2045_v60, %v2140_v61 }
  0x4d   : > { %1343 = vmatpush.bf16.msk.msrb.mxu0 %vm2972_vm9, %v1596_v17  ;;  %1349 = vmatpush.bf16.msk.msra.mxu2 %vm2973_vm11, %v1596_v17  ;;  %vm2397_vm9 = vmpackc.low %vm285_vm10, %vm282_vm2  ;;  %vm2978_vm11 = vnez %v2926_v50  ;;  %vm2979_vm2 = vnez %v2874_v28  ;;  %vm324_vm10 = vcmp.eq.s32.totalorder %v2101_v31, %v2140_v61 }
  0x4e   : > { %1308 = vmatpush.bf16.msk.msrb.mxu1 %vm2358_vm8, %v1596_v17  ;;  %1324 = vmatpush.bf16.msk.msrb.mxu3 %vm2368_vm13, %v1596_v17  ;;  %v2975_v40 = vsel %vm2397_vm9, 4294967295, %v2974_v40  ;;  %vm2401_vm15 = vmpackc.low %vm333_vm0, %vm330_vm3  ;;  %vm279_vm8 = vcmp.eq.s32.totalorder %v2087_v0, %v2140_v61  ;;  %vm327_vm3 = vcmp.eq.s32.totalorder %v2104_v58, %v2140_v61  ;;  %vm2984_vm13 = vnez %v2936_v10 }
  0x4f   : > { %vm2425_vm0 = vmpackc.low %vm279_vm8, %vm276_vm14  ;;  %vm2987_vm14 = vnez %v2868_v22  ;;  %vm2988_vm8 = vnez %v2866_v19 }
  0x50   : > { %v2981_v2 = vsel %vm2425_vm0, 4294967295, %v2980_v2 }
  0x51   : > { %1345 = vmatpush.bf16.msk.msrb.mxu0 %vm2978_vm11, %v1596_v17  ;;  %1351 = vmatpush.bf16.msk.msra.mxu2 %vm2979_vm2, %v1596_v17  ;;  %vm2429_vm11 = vmpackc.low %vm327_vm3, %vm324_vm10  ;;  %vm2985_vm2 = vnez %v2883_v39  ;;  %vm2989_vm10 = vnez %v2896_v47  ;;  %vm2990_vm3 = vnez %v2878_v35 }
  0x52   : > { %1310 = vmatpush.bf16.msk.msrb.mxu1 %vm2397_vm9, %v1596_v17  ;;  %1326 = vmatpush.bf16.msk.msrb.mxu3 %vm2401_vm15, %v1596_v17  ;;  %v2983_v43 = vsel %vm2429_vm11, 4294967295, %v2982_v43  ;;  %vm2986_vm9 = vnez %v2870_v25 }
  0x55   : > { %1347 = vmatpush.bf16.msk.msrb.mxu0 %vm2984_vm13, %v1596_v17  ;;  %1353 = vmatpush.bf16.msk.msra.mxu2 %vm2985_vm2, %v1596_v17  ;;  %vm2991_vm13 = vnez %v2876_v32 }
  0x56   : > { %1312 = vmatpush.bf16.msk.msrb.mxu1 %vm2425_vm0, %v1596_v17  ;;  %1328 = vmatpush.bf16.msk.msrb.mxu3 %vm2429_vm11, %v1596_v17 }
  0x58   : > { %777 = vmatmul.bf16.vlgmr.msrb.gmra.mxu0 %v2362_v24 }
  0x59   : > { %1384 = vmatpush.bf16.msk.msra.mxu0 %vm2986_vm9, %v1596_v17  ;;  %729 = vmatmul.bf16.vlgmr.msrb.gmra.mxu1 %v1853_v36  ;;  %vm2992_vm9 = vcmask 130048   ;;  %v2997_v36 = vld [vmem:[#allocation4_spill] sm:$0xff] }
  0x5a   : > { %1368 = vmatpush.bf16.msk.msra.mxu3 %vm2987_vm14, %v1596_v17  ;;  %1365 = vmatpush.bf16.msk.msra.mxu1 %vm2988_vm8, %v1596_v17  ;;  %vm2993_vm8 = vnez %v2907_v55  ;;  %vm2994_vm14 = vnez %v2891_v45 }
  0x5b   : > { %1355 = vmatpush.bf16.msk.msra.mxu2 %vm2989_vm10, %v1596_v17  ;;  %742 = vmatmul.bf16.vlgmr.msrb.gmra.mxu3 %v1855_v37  ;;  %v3002_v37 = vld [vmem:[#allocation6_spill] sm:$0xff] }
  0x5c   : > { %1331 = vmatmul.msk.bf16.vlgmr.msrb.gmra.mxu2 %vm2992_vm9, %v1769_v26  ;;  %v2999_v26 = vld [vmem:[#allocation3_spill] sm:$0xff] }
  0x5d   : > { %1386 = vmatpush.bf16.msk.msra.mxu0 %vm2990_vm3, %v1596_v17  ;;  %vm2995_vm3 = vnez %v2887_v42  ;;  %vm3000_vm9 = vnez %v2999_v26 }
  0x5e   : > { %1400 = vmatpush.bf16.msk.msrb.mxu1 %vm2284_vm5, %v1596_v17  ;;  %1370 = vmatpush.bf16.msk.msra.mxu3 %vm2991_vm13, %v1596_v17  ;;  %vm2996_vm5 = vnez %v2918_v63  ;;  %vm2998_vm13 = vnez %v2997_v36 }
  0x5f   : > { %1357 = vmatpush.bf16.msk.msra.mxu2 %vm2993_vm8, %v1596_v17  ;;  %vm3001_vm8 = vnez %v2928_v1 }
  0x61   : > { %1388 = vmatpush.bf16.msk.msra.mxu0 %vm2994_vm14, %v1596_v17  ;;  %vm3003_vm14 = vnez %v3002_v37 }
  0x62   : > { %1372 = vmatpush.bf16.msk.msra.mxu3 %vm2995_vm3, %v1596_v17  ;;  %vm3005_vm3 = vnez %v3004_v44 }
  0x63   : > { %1359 = vmatpush.bf16.msk.msra.mxu2 %vm2996_vm5, %v1596_v17  ;;  %vm3006_vm5 = vnez %v2938_v53 }
  0x65   : > { %1390 = vmatpush.bf16.msk.msra.mxu0 %vm2998_vm13, %v1596_v17  ;;  %vm3007_vm13 = vcmask 130048  }
  0x66   : > { %1374 = vmatpush.bf16.msk.msra.mxu3 %vm3000_vm9, %v1596_v17 }
  0x67   : > { %1361 = vmatpush.bf16.msk.msra.mxu2 %vm3001_vm8, %v1596_v17 }
  0x69   : > { %1392 = vmatpush.bf16.msk.msra.mxu0 %vm3003_vm14, %v1596_v17  ;;  %1366 = vmatmul.msk.bf16.vlgmr.msra.gmra.mxu1 %vm3007_vm13, %v2364_v29  ;;  %vm3009_vm14 = vnez %v3008_v48  ;;  %vm3012_vm13 = vnez %v2950_v12 }
  0x6a   : > { %1376 = vmatpush.bf16.msk.msra.mxu3 %vm3005_vm3, %v1596_v17  ;;  %1419 = vmatpush.bf16.msk.msra.mxu1 %vm2226_vm4, %v1596_v17  ;;  %vm3011_vm3 = vnez %v3010_v49  ;;  %vm3013_vm4 = vnez %v2948_v6 }
  0x6b   : > { %1363 = vmatpush.bf16.msk.msra.mxu2 %vm3006_vm5, %v1596_v17 }
  0x6d   : > { %1394 = vmatpush.bf16.msk.msra.mxu0 %vm3009_vm14, %v1596_v17  ;;  %vm3017_vm14 = vnez %v3016_v52 }
  0x6e   : > { %1378 = vmatpush.bf16.msk.msra.mxu3 %vm3011_vm3, %v1596_v17  ;;  %790 = vmatmul.bf16.vlgmr.msra.gmra.mxu2 %v2379_v33  ;;  %vm3018_vm3 = vnez %v2942_v3 }
  0x6f   : > { %1403 = vmatpush.bf16.msk.msrb.mxu2 %vm2214_vm12, %v1596_v17  ;;  %1421 = vmatpush.bf16.msk.msra.mxu1 %vm3012_vm13, %v1596_v17  ;;  %vm3015_vm12 = vnez %v3014_v51  ;;  %vm3019_vm13 = vnez %v2940_v7 }
  0x71   : > { %1396 = vmatpush.bf16.msk.msra.mxu0 %vm3015_vm12, %v1596_v17  ;;  %vm3020_vm12 = vnez %v2862_v16  ;;  %v889_v16 = vld.sshfl [vmem:[#allocation1] sm:$0xff pattern:$0x73625140] }
  0x72   : > { %1380 = vmatpush.bf16.msk.msra.mxu3 %vm3017_vm14, %v1596_v17  ;;  %vm3021_vm14 = vnez %v2960_v8 }
  0x73   : > { %1405 = vmatpush.bf16.msk.msrb.mxu2 %vm3013_vm4, %v1596_v17  ;;  %1423 = vmatpush.bf16.msk.msra.mxu1 %vm2273_vm6, %v1596_v17  ;;  %vm3022_vm6 = vnez %v2958_v15 }
  0x75   : > { %1398 = vmatpush.bf16.msk.msra.mxu0 %vm3018_vm3, %v1596_v17  ;;  %vm3023_vm3 = vnez %v2864_v18  ;;  %v890_v18 = vld.sshfl [vmem:[#allocation1 + $0x8] sm:$0xff pattern:$0x73625140] }
  0x76   : > { %1382 = vmatpush.bf16.msk.msra.mxu3 %vm3019_vm13, %v1596_v17  ;;  %vm3026_vm13 = vnez %v2966_v21 }
  0x77   : > { %1407 = vmatpush.bf16.msk.msrb.mxu2 %vm2265_vm7, %v1596_v17  ;;  %1425 = vmatpush.bf16.msk.msra.mxu1 %vm3021_vm14, %v1596_v17  ;;  %vm3027_vm14 = vnez %v2964_v20 }
  0x78   : > { %829 = vmatmul.bf16.vlgmr.msra.gmra.mxu0 %v2379_v33 }
  0x79   : > { %1438 = vmatpush.bf16.msk.msrb.mxu0 %vm3020_vm12, %v1596_v17  ;;  %816 = vmatmul.bf16.vlgmr.msra.gmra.mxu3 %v2362_v24  ;;  %vm3024_vm12 = vnez %v2872_v27 }
  0x7a   : > { %1435 = vmatpush.bf16.msk.msrb.mxu3 %vm2316_vm1, %v1596_v17  ;;  %vm3025_vm1 = vcmask 130048  }
  0x7b   : > { %1409 = vmatpush.bf16.msk.msrb.mxu2 %vm3022_vm6, %v1596_v17  ;;  %1401 = vmatmul.msk.bf16.vlgmr.msrb.gmra.mxu1 %vm3025_vm1, %v2364_v29  ;;  %vm3028_vm6 = vnez %v2874_v28  ;;  %vm3031_vm1 = vnez %v2968_v23 }
  0x7c   : > { %1427 = vmatpush.bf16.msk.msra.mxu1 %vm3026_vm13, %v1596_v17  ;;  %vm3032_vm13 = vnez %v2894_v46 }
  0x7d   : > { %1440 = vmatpush.bf16.msk.msrb.mxu0 %vm3024_vm12, %v1596_v17  ;;  %vm3030_vm12 = vnez %v2971_v30 }
  0x7e   : > { %1454 = vmatpush.bf16.msk.msra.mxu3 %vm3023_vm3, %v1596_v17  ;;  %vm3029_vm3 = vnez %v2881_v38 }
  0x7f   : > { %1411 = vmatpush.bf16.msk.msrb.mxu2 %vm3027_vm14, %v1596_v17 }
  0x80   : > { %1429 = vmatpush.bf16.msk.msra.mxu1 %vm3030_vm12, %v1596_v17 }
  0x81   : > { %1442 = vmatpush.bf16.msk.msrb.mxu0 %vm3029_vm3, %v1596_v17  ;;  %vm3034_vm3 = vnez %v2905_v54 }
  0x82   : > { %1456 = vmatpush.bf16.msk.msra.mxu3 %vm3028_vm6, %v1596_v17  ;;  %vm3033_vm6 = vnez %v2975_v40 }
  0x83   : > { %1413 = vmatpush.bf16.msk.msrb.mxu2 %vm3031_vm1, %v1596_v17 }
  0x84   : > { %1431 = vmatpush.bf16.msk.msra.mxu1 %vm2401_vm15, %v1596_v17 }
  0x85   : > { %1444 = vmatpush.bf16.msk.msrb.mxu0 %vm3032_vm13, %v1596_v17  ;;  %vm3036_vm13 = vnez %v2868_v22 }
  0x86   : > { %1458 = vmatpush.bf16.msk.msra.mxu3 %vm2985_vm2, %v1596_v17  ;;  %vm3035_vm2 = vcmask 130048  }
  0x87   : > { %1415 = vmatpush.bf16.msk.msrb.mxu2 %vm3033_vm6, %v1596_v17 }
  0x88   : > { %1433 = vmatpush.bf16.msk.msra.mxu1 %vm2429_vm11, %v1596_v17  ;;  %vm3039_vm11 = vnez %v2866_v19  ;;  %v891_v19 = vld.sshfl [vmem:[#allocation1 + $0x10] sm:$0xff pattern:$0x73625140] }
  0x89   : > { %1446 = vmatpush.bf16.msk.msrb.mxu0 %vm3034_vm3, %v1596_v17  ;;  %1436 = vmatmul.msk.bf16.vlgmr.msrb.gmra.mxu3 %vm3035_vm2, %v2364_v29  ;;  %vm3038_vm3 = vnez %v2916_v62  ;;  %vm3040_vm2 = vnez %v2876_v32 }
  0x8a   : > { %1460 = vmatpush.bf16.msk.msra.mxu3 %vm2989_vm10, %v1596_v17  ;;  %vm3037_vm10 = vnez %v2907_v55 }
  0x8b   : > { %1417 = vmatpush.bf16.msk.msrb.mxu2 %vm2425_vm0, %v1596_v17  ;;  %868 = vmatmul.bf16.vlgmr.msra.gmra.mxu1 %v2379_v33  ;;  %vm3044_vm0 = vnez %v2887_v42 }
  0x8c   : > { %1473 = vmatpush.bf16.msk.msrb.mxu1 %vm3036_vm13, %v1596_v17  ;;  %vm3041_vm13 = vnez %v2870_v25 }
  0x8d   : > { %1448 = vmatpush.bf16.msk.msrb.mxu0 %vm3038_vm3, %v1596_v17  ;;  %vm3043_vm3 = vnez %v2926_v50 }
  0x8e   : > { %1462 = vmatpush.bf16.msk.msra.mxu3 %vm3037_vm10, %v1596_v17  ;;  %855 = vmatmul.bf16.vlgmr.msrb.gmra.mxu2 %v2362_v24  ;;  %vm3042_vm10 = vnez %v2918_v63 }
  0x8f   : > { %1470 = vmatpush.bf16.msk.msra.mxu2 %vm3039_vm11, %v1596_v17  ;;  %vm3045_vm11 = vnez %v2878_v35 }
  0x90   : > { %1475 = vmatpush.bf16.msk.msrb.mxu1 %vm3040_vm2, %v1596_v17  ;;  %vm3046_vm2 = vnez %v2936_v10 }
  0x91   : > { %1450 = vmatpush.bf16.msk.msrb.mxu0 %vm3043_vm3, %v1596_v17  ;;  %vm3052_vm3 = vnez %v2997_v36 }
  0x92   : > { %1464 = vmatpush.bf16.msk.msra.mxu3 %vm3042_vm10, %v1596_v17  ;;  %vm3050_vm10 = vnez %v2946_v5 }
  0x93   : > { %1489 = vmatpush.bf16.msk.msrb.mxu2 %vm3041_vm13, %v1596_v17  ;;  %vm3047_vm13 = vnez %v2956_v11 }
  0x94   : > { %1477 = vmatpush.bf16.msk.msrb.mxu1 %vm3044_vm0, %v1596_v17  ;;  %vm3048_vm0 = vnez %v2891_v45 }
  0x95   : > { %1452 = vmatpush.bf16.msk.msrb.mxu0 %vm3046_vm2, %v1596_v17  ;;  %vm3055_vm2 = vnez %v3010_v49 }
  0x96   : > { %1466 = vmatpush.bf16.msk.msra.mxu3 %vm3001_vm8, %v1596_v17  ;;  %vm3049_vm8 = vnez %v2944_v4 }
  0x97   : > { %1491 = vmatpush.bf16.msk.msrb.mxu2 %vm3045_vm11, %v1596_v17  ;;  %vm3054_vm11 = vcmask 130048  }
  0x98   : > { %1479 = vmatpush.bf16.msk.msrb.mxu1 %vm3000_vm9, %v1596_v17  ;;  %904 = vmatmul.bf16.vlgmr.msrb.gmra.mxu0 %v889_v16  ;;  %vm3051_vm9 = vnez %v3004_v44 }
  0x99   : > { %1505 = vmatpush.bf16.msk.msra.mxu0 %vm3047_vm13, %v1596_v17  ;;  %vm3056_vm13 = vnez %v3002_v37  ;;  %v3071_v37 = vld [vmem:[#allocation2_spill] sm:$0xff] }
  0x9a   : > { %1468 = vmatpush.bf16.msk.msra.mxu3 %vm3006_vm5, %v1596_v17  ;;  %vm3053_vm5 = vnez %v2950_v12 }
  0x9b   : > { %1493 = vmatpush.bf16.msk.msrb.mxu2 %vm3048_vm0, %v1596_v17  ;;  %vm3058_vm0 = vnez %v3016_v52 }
  0x9c   : > { %1481 = vmatpush.bf16.msk.msrb.mxu1 %vm3051_vm9, %v1596_v17  ;;  %vm3061_vm9 = vnez %v2960_v8 }
  0x9d   : > { %1524 = vmatpush.bf16.msk.msrb.mxu0 %vm3050_vm10, %v1596_v17  ;;  %917 = vmatmul.bf16.vlgmr.msra.gmra.mxu3 %v890_v18  ;;  %vm3060_vm10 = vnez %v2958_v15 }
  0x9e   : > { %1508 = vmatpush.bf16.msk.msrb.mxu3 %vm3049_vm8, %v1596_v17  ;;  %1471 = vmatmul.msk.bf16.vlgmr.msra.gmra.mxu2 %vm3054_vm11, %v891_v19  ;;  %vm3059_vm8 = vnez %v3008_v48 }
  0x9f   : > { %1495 = vmatpush.bf16.msk.msrb.mxu2 %vm3052_vm3, %v1596_v17  ;;  %v678_v22 = vpop.f32.mrf.mxu2  ;;  %vm3063_vm3 = vnez %v3014_v51  ;;  %v1597_v51 = vmov 0  }
  0xa0   : > { %1483 = vmatpush.bf16.msk.msrb.mxu1 %vm3055_vm2, %v1596_v17  ;;  %vm3066_vm2 = vnez %v2962_v9 }
  0xa1   : > { %1526 = vmatpush.bf16.msk.msrb.mxu0 %vm3053_vm5, %v1596_v17  ;;  %vm3064_vm5 = vmmov %vm3054_vm11  ;;  %vm3065_vm11 = vnez %v2966_v21 }
  0xa2   : > { %1510 = vmatpush.bf16.msk.msrb.mxu3 %vm3013_vm4, %v1596_v17  ;;  %vm3057_vm4 = vnez %v2954_v14 }
  0xa3   : > { %1497 = vmatpush.bf16.msk.msrb.mxu2 %vm3056_vm13, %v1596_v17  ;;  %vm3067_vm13 = vnez %v2942_v3 }
  0xa4   : > { %1485 = vmatpush.bf16.msk.msrb.mxu1 %vm3058_vm0, %v1596_v17  ;;  %vm1030_vm0 = vcmask 1043456  }
  0xa5   : > { %1528 = vmatpush.bf16.msk.msrb.mxu0 %vm3057_vm4, %v1596_v17 }
  0xa6   : > { %1512 = vmatpush.bf16.msk.msrb.mxu3 %vm2265_vm7, %v1596_v17  ;;  %vm3062_vm7 = vnez %v2940_v7 }
  0xa7   : > { %1499 = vmatpush.bf16.msk.msrb.mxu2 %vm3059_vm8, %v1596_v17  ;;  %v680_v7 = vpop.f32.mrf.mxu2 }
  0xa8   : > { %1487 = vmatpush.bf16.msk.msrb.mxu1 %vm3062_vm7, %v1596_v17  ;;  %1506 = vmatmul.msk.bf16.vlgmr.msra.gmra.mxu0 %vm3064_vm5, %v891_v19 }
  0xa9   : > { %1530 = vmatpush.bf16.msk.msrb.mxu0 %vm3061_vm9, %v1596_v17 }
  0xaa   : > { %1514 = vmatpush.bf16.msk.msrb.mxu3 %vm3060_vm10, %v1596_v17 }
  0xab   : > { %1501 = vmatpush.bf16.msk.msrb.mxu2 %vm3063_vm3, %v1596_v17  ;;  %943 = vmatmul.bf16.vlgmr.msrb.gmra.mxu1 %v889_v16 }
  0xac   : > { %1540 = vmatpush.bf16.msk.msra.mxu1 %vm3066_vm2, %v1596_v17 }
  0xad   : > { %1532 = vmatpush.bf16.msk.msrb.mxu0 %vm3065_vm11, %v1596_v17 }
  0xae   : > { %1516 = vmatpush.bf16.msk.msrb.mxu3 %vm3027_vm14, %v1596_v17  ;;  %vm3068_vm14 = vnez %v2981_v2 }
  0xaf   : > { %1503 = vmatpush.bf16.msk.msrb.mxu2 %vm3067_vm13, %v1596_v17 }
  0xb1   : > { %1534 = vmatpush.bf16.msk.msrb.mxu0 %vm3030_vm12, %v1596_v17  ;;  %vm3070_vm12 = vmmov %vm3064_vm5 }
  0xb2   : > { %1518 = vmatpush.bf16.msk.msrb.mxu3 %vm3031_vm1, %v1596_v17  ;;  %956 = vmatmul.bf16.vlgmr.msrb.gmra.mxu2 %v890_v18  ;;  %vm3069_vm1 = vnez %v2983_v43 }
  0xb5   : > { %1536 = vmatpush.bf16.msk.msrb.mxu0 %vm2401_vm15, %v1596_v17  ;;  %v652_v25 = vpop.f32.mrf.mxu0  ;;  %vm1016_vm15 = vcmp.eq.s32.totalorder %v3071_v37, 255 }
  0xb6   : > { %1520 = vmatpush.bf16.msk.msrb.mxu3 %vm3033_vm6, %v1596_v17  ;;  %v1017_v52 = vsel %vm1016_vm15, 1, %v1597_v51 }
  0xb7   : > { %v1018_v7 = vperm.slane %v1017_v52, 0 }
  0xb8   : > { %v665_v27 = vpop.f32.mrf.mxu1 }
  0xb9   : > { %1538 = vmatpush.bf16.msk.msrb.mxu0 %vm3069_vm1, %v1596_v17  ;;  %v666_v28 = vadd.f32 %v665_v27, %v652_v25  ;;  %vm1021_vm4 = vcmp.eq.s32.totalorder %v1018_v7, 1 }
  0xba   : > { %1522 = vmatpush.bf16.msk.msrb.mxu3 %vm3068_vm14, %v1596_v17 }
  0xbb   : > { %1541 = vmatmul.msk.bf16.vlgmr.msra.gmra.mxu1 %vm3070_vm12, %v891_v19  ;;  %v679_v32 = vadd.f32 %v678_v22, %v666_v28 }
  0xbc   : > { %995 = vmatmul.bf16.vlgmr.msrb.gmra.mxu0 %v890_v18  ;;  %v1019_v18 = vperm.slane %v1017_v52, 1 }
  0xbd   : > { %982 = vmatmul.bf16.vlgmr.msrb.gmra.mxu3 %v889_v16  ;;  %v654_v35 = vpop.f32.mrf.mxu0 }
  0xbe   : > { %v691_v39 = vpop.f32.mrf.mxu3  ;;  %vm1022_vm6 = vcmp.eq.s32.totalorder %v1019_v18, 1 }
  0xbf   : > { %v704_v38 = vpop.f32.mrf.mxu2 }
  0xc0   : > { %v667_v42 = vpop.f32.mrf.mxu1  ;;  %v705_v45 = vadd.f32 %v704_v38, %v691_v39 }
  0xc6   : > { %v693_v47 = vpop.f32.mrf.mxu3 }
  0xc7   : > { %v706_v46 = vpop.f32.mrf.mxu2 }
  0xcf   : > { %v717_v50 = vpop.f32.mrf.mxu2 }
  0xd0   : > { %v718_v53 = vadd.f32 %v717_v50, %v705_v45 }
  0xd5   : > { %v778_v54 = vpop.f32.mrf.mxu0 }
  0xd6   : > { %v779_v55 = vadd.f32 %v778_v54, %v679_v32  ;;  %v730_v17 = vpop.f32.mrf.mxu1  ;;  %v1020_v54 = vperm.slane %v1017_v52, 2 }
  0xd7   : > { %v719_v56 = vpop.f32.mrf.mxu2 }
  0xd8   : > { %vm1023_vm8 = vcmp.eq.s32.totalorder %v1020_v54, 1 }
  0xdd   : > { %v780_v57 = vpop.f32.mrf.mxu0 }
  0xde   : > { %v743_v58 = vpop.f32.mrf.mxu3  ;;  %v732_v60 = vpop.f32.mrf.mxu1 }
  0xdf   : > { %v744_v59 = vadd.f32 %v743_v58, %v730_v17  ;;  %v756_v61 = vpop.f32.mrf.mxu2 }
  0xe1   : > { %v757_v62 = vadd.f32 %v756_v61, %v744_v59 }
  0xe6   : > { %v745_v63 = vpop.f32.mrf.mxu3  ;;  %v804_v0 = vpop.f32.mrf.mxu1 }
  0xe7   : > { %v758_v1 = vpop.f32.mrf.mxu2 }
  0xee   : > { %v806_v31 = vpop.f32.mrf.mxu1 }
  0xf1   : > { %v791_v10 = vpop.f32.mrf.mxu2 }
  0xf2   : > { %v792_v3 = vadd.f32 %v791_v10, %v779_v55 }
  0xf4   : > { %v805_v4 = vadd.f32 %v804_v0, %v792_v3 }
  0xf5   : > { %v830_v5 = vpop.f32.mrf.mxu0 }
  0xf8   : > { %v843_v6 = vpop.f32.mrf.mxu1 }
  0xf9   : > { %v793_v12 = vpop.f32.mrf.mxu2 }
  0xfc   : > { %v817_v13 = vpop.f32.mrf.mxu3 }
  0xfd   : > { %v832_v14 = vpop.f32.mrf.mxu0  ;;  %v818_v36 = vadd.f32 %v817_v13, %v718_v53 }
  0xff   : > { %v831_v49 = vadd.f32 %v830_v5, %v818_v36 }
 0x100   : > { %v845_v11 = vpop.f32.mrf.mxu1 }
 0x101   : > { %v844_v25 = vadd.f32 %v843_v6, %v831_v49 }
 0x104   : > { %v819_v15 = vpop.f32.mrf.mxu3 }
 0x108   : > { %v869_v8 = vpop.f32.mrf.mxu1 }
 0x10c   : > { %v882_v9 = vpop.f32.mrf.mxu3 }
 0x110   : > { %v871_v21 = vpop.f32.mrf.mxu1 }
 0x111   : > { %v856_v20 = vpop.f32.mrf.mxu2 }
 0x112   : > { %v857_v32 = vadd.f32 %v856_v20, %v757_v62 }
 0x114   : > { %v884_v24 = vpop.f32.mrf.mxu3  ;;  %v870_v45 = vadd.f32 %v869_v8, %v857_v32 }
 0x115   : > { %v905_v23 = vpop.f32.mrf.mxu0 }
 0x116   : > { %v883_v57 = vadd.f32 %v882_v9, %v870_v45 }
 0x119   : > { %v858_v29 = vpop.f32.mrf.mxu2 }
 0x11d   : > { %v907_v30 = vpop.f32.mrf.mxu0 }
 0x120   : > { %v918_v33 = vpop.f32.mrf.mxu3 }
 0x121   : > { %v931_v34 = vpop.f32.mrf.mxu2  ;;  %v919_v44 = vadd.f32 %v918_v33, %v905_v23 }
 0x123   : > { %v932_v19 = vadd.f32 %v931_v34, %v919_v44 }
 0x125   : > { %v970_v40 = vpop.f32.mrf.mxu0  ;;  %v1013_v35 = vadd.f32 %v932_v19, %v805_v4 }
 0x127   : > { %v1024_v50 = vsel %vm1021_vm4, -inf, %v1013_v35 }
 0x128   : > { %v920_v41 = vpop.f32.mrf.mxu3  ;;  %v944_v2 = vpop.f32.mrf.mxu1 }
 0x129   : > { %v933_v43 = vpop.f32.mrf.mxu2 }
 0x12d   : > { %v972_v26 = vpop.f32.mrf.mxu0 }
 0x130   : > { %v946_v48 = vpop.f32.mrf.mxu1 }
 0x135   : > { %v957_v16 = vpop.f32.mrf.mxu2 }
 0x136   : > { %v958_v22 = vadd.f32 %v957_v16, %v944_v2 }
 0x138   : > { %v971_v27 = vadd.f32 %v970_v40, %v958_v22  ;;  %v1009_v39 = vpop.f32.mrf.mxu1 }
 0x139   : > { %v996_v28 = vpop.f32.mrf.mxu0 }
 0x13a   : > { %v1014_v38 = vadd.f32 %v971_v27, %v844_v25 }
 0x13c   : > { %v1025_v42 = vsel %vm1022_vm6, -inf, %v1014_v38 }
 0x13d   : > { %v1029_v46 = vrot.slane %v1025_v42, 4  ;;  %v959_v47 = vpop.f32.mrf.mxu2 }
 0x13f   : > { %v1031_v17 = vsel %vm1030_vm0, %v1024_v50, %v1029_v46 }
 0x140   : > { %v983_v53 = vpop.f32.mrf.mxu3  ;;  %1033 = vst [vmem:[%s232_s6] sm:$0xff] %v1031_v17  ;;  %v1011_v59 = vpop.f32.mrf.mxu1 }
 0x141   : > { %v997_v55 = vadd.f32 %v996_v28, %v983_v53  ;;  %v998_v56 = vpop.f32.mrf.mxu0 }
 0x143   : > { %v1010_v58 = vadd.f32 %v1009_v39, %v997_v55 }
 0x145   : > { %v1015_v60 = vadd.f32 %v1010_v58, %v883_v57 }
 0x147   : > { %v1026_v61 = vsel %vm1023_vm8, -inf, %v1015_v60 }
 0x148   : > { %1034 = vst [vmem:[%s232_s6 + $0x8] sm:$0xf] %v1026_v61  ;;  %v985_v62 = vpop.f32.mrf.mxu3 }
 0x149 PF: > { %s14_s17 = sadd.s32 1, %s1594_s17   ;;  %s3072_s15 = smov %s1590_s16 }
 0x14a   : > { %p11_p5 = scmp.ge.s32.totalorder %s14_s17, 4   ;;  %s3073_s16 = smov %s3075_s18 }
 0x14c   :  { %13 = sbr.rel (!%p11_p5) target bundleno = 2 (0x2), region = 66 }

</bundles_post_ra>
